<compile_context>
chip_gen: v7x
topology: tpu7x:2x2x1
jax: 0.10.0
libtpu: 0.0.40
codegen_flags: <defaults>
</compile_context>

<pallas_src>
import functools

import jax
import jax.numpy as jnp
from jax.experimental import pallas as pl
from jax.experimental.pallas import tpu as pltpu


def _attention_kernel(wq_ref, keys_ref, ua_wt_ref, ua_b_ref, va_ref,
                      ctx_ref, w_ref,
                      m_scratch, l_scratch, acc_scratch, scores_scratch,
                      *, tb, ts, tanh_bf16):
    s_idx = pl.program_id(1)
    n_s = pl.num_programs(1)

    # ---- once per batch block: reset online-softmax state -------------------
    @pl.when(s_idx == 0)
    def _init():
        m_scratch[...] = jnp.full(m_scratch.shape, -jnp.inf, jnp.float32)
        l_scratch[...] = jnp.zeros(l_scratch.shape, jnp.float32)
        acc_scratch[...] = jnp.zeros(acc_scratch.shape, jnp.float32)

    # ---- per (batch-block, sequence-tile) ------------------------------------
    k = keys_ref[...]                                       # (TB, TS, H) bf16
    h = k.shape[-1]
    # One big (TB*TS, H) x (H, H) MXU matmul instead of TB*TS tiny ones.
    uk = (jnp.dot(k.reshape(tb * ts, h), ua_wt_ref[...],
                  preferred_element_type=jnp.float32)
          + ua_b_ref[...]).reshape(tb, ts, h)               # (TB, TS, H) f32
    pre = wq_ref[...] + uk                                   # (TB,1,H)+(TB,TS,H)
    if tanh_bf16:
        t = jnp.tanh(pre.astype(jnp.bfloat16))   # bf16 EUP path (v6e / v7x)
    else:
        t = jnp.tanh(pre)                        # f32 (v5e: no bf16 VPU/EUP)

    # Va scores for this tile, lane-major (TB, 1, TS).  Va bias dropped: the
    # softmax is invariant to a constant shift of the scores (exact no-op).
    va = jnp.broadcast_to(va_ref[...].astype(t.dtype)[None], (tb, 1, h))
    scores = jnp.einsum('boh,bth->bot', va, t,
                        preferred_element_type=jnp.float32)  # (TB, 1, TS)

    m_prev = m_scratch[...]
    m_new = jnp.maximum(m_prev, jnp.max(scores, axis=-1, keepdims=True))
    alpha = jnp.exp(m_prev - m_new)
    e = jnp.exp(scores - m_new)                              # (TB, 1, TS)
    l_scratch[...] = alpha * l_scratch[...] + jnp.sum(e, axis=-1, keepdims=True)
    acc_scratch[...] = alpha * acc_scratch[...] + jnp.einsum(
        'bot,bth->boh', e.astype(k.dtype), k,
        preferred_element_type=jnp.float32)                  # (TB, 1, H)
    m_scratch[...] = m_new

    # Contiguous, lane-offset store of this tile's raw scores (no concatenate
    # epilogue); the offset is 128-aligned whenever TS is a multiple of 128.
    if ts == scores_scratch.shape[-1]:
        scores_scratch[...] = scores            # single tile: static full store
    else:
        start = s_idx * ts
        if ts % 128 == 0:
            start = pl.multiple_of(start, 128)
        scores_scratch[:, :, pl.ds(start, ts)] = scores

    # ---- after the last seq tile: normalize & write lane-dense rows ---------
    @pl.when(s_idx == n_s - 1)
    def _finalize():
        inv_l = pl.reciprocal(l_scratch[...], approx=False)  # exact: sums to 1
        ctx_ref[...] = (acc_scratch[...] * inv_l).astype(ctx_ref.dtype)
        w = jnp.exp(scores_scratch[...] - m_scratch[...]) * inv_l
        w_ref[...] = w.astype(w_ref.dtype)


def _pick_batch_tile(batch):
    # Fill sublanes (TB up to 16) while keeping >= 2 batch blocks so both
    # TensorCores of a v7x megacore get work on the "parallel" axis.
    for cand in (16, 8, 4, 2):
        if batch % cand == 0 and batch // cand >= 2:
            return cand
    for cand in (16, 8, 4, 2):
        if batch % cand == 0:
            return cand
    return 1


def _pick_seq_tile(seq, tb, hidden, target_bytes=512 * 1024):
    # Size the streamed keys tile so one DMA moves ~0.5 MB of bf16.
    if seq % 128 != 0:
        # TODO(synk): masked last-tile path for sequence lengths that are not a
        # multiple of 128; fall back to a single whole-sequence tile.
        return seq
    ts = max(128, (target_bytes // max(1, tb * hidden * 2)) // 128 * 128)
    ts = min(ts, seq)
    while seq % ts != 0:
        ts -= 128
    return ts


def _bf16_eup_available():
    # bf16 tanh only pays off on v6e / v7x (v5e has no bf16 VPU/EUP path).
    try:
        kind = jax.devices()[0].device_kind.lower()
    except Exception:
        return False
    return ("v6" in kind) or ("v7" in kind)


def attention_forward(query, keys, params, *, seq_tile=None, batch_tile=None,
                      tanh_bf16=None):
    """query: (1, B, H), keys: (S, B, H) -> (context (B,1,H), weights (B,1,S))."""
    S, B, H = keys.shape
    wa_w, wa_b, ua_w, ua_b, va_w, va_b = params
    del va_b  # exact no-op: softmax cancels a constant shift of the scores

    TB = batch_tile if batch_tile is not None else _pick_batch_tile(B)
    TS = seq_tile if seq_tile is not None else _pick_seq_tile(S, TB, H)
    assert B % TB == 0 and S % TS == 0
    n_b, n_s = B // TB, S // TS
    if tanh_bf16 is None:
        tanh_bf16 = _bf16_eup_available()

    # Wrapper-side layout plumbing / hoisting:
    #   * Wa(query)+bias is a tiny (B,1,H)x(H,H) matmul -> do it in XLA and feed
    #     the result; no resident Wa weights, no M=1 cold-path matmul.
    #   * keys go batch-major bf16; allow_input_fusion lets XLA fuse the
    #     transpose + cast into the pallas_call input (no extra HBM pass).
    q_b1h = jnp.transpose(query, (1, 0, 2)).astype(jnp.float32)        # (B,1,H)
    wq = (jnp.einsum('boh,kh->bok', q_b1h, wa_w.astype(jnp.float32))
          + wa_b.reshape(1, 1, H).astype(jnp.float32))                 # (B,1,H)
    keys_bsh = jnp.transpose(keys, (1, 0, 2)).astype(jnp.bfloat16)     # (B,S,H)
    ua_wt = ua_w.T.astype(jnp.bfloat16)                                # (H,H)
    ua_b2 = ua_b.reshape(1, H).astype(jnp.float32)
    va_row = va_w.reshape(1, H).astype(jnp.float32)

    # Explicit VMEM budget (double-buffered keys + weights + scratch), clamped
    # below v7x's 64 MiB physical VMEM.
    est = (2 * 2 * TB * TS * H        # keys tile, double buffered, bf16
           + 2 * H * H                # Ua weights, bf16
           + 4 * 4 * TB * S           # scores scratch + weights output rows
           + 4 * 16 * TB * H          # wq / acc / context rows
           + (2 << 20))               # headroom
    vmem_limit = int(min(max(est, 32 << 20), 48 << 20))

    kernel = pl.pallas_call(
        functools.partial(_attention_kernel, tb=TB, ts=TS,
                          tanh_bf16=tanh_bf16),
        grid=(n_b, n_s),
        in_specs=[
            pl.BlockSpec((TB, 1, H), lambda b, s: (b, 0, 0)),   # Wa(q)+b rows
            pl.BlockSpec((TB, TS, H), lambda b, s: (b, s, 0)),  # keys tile
            pl.BlockSpec((H, H), lambda b, s: (0, 0)),          # Ua.weight^T
            pl.BlockSpec((1, H), lambda b, s: (0, 0)),          # Ua.bias
            pl.BlockSpec((1, H), lambda b, s: (0, 0)),          # Va.weight
        ],
        out_specs=[
            pl.BlockSpec((TB, 1, H), lambda b, s: (b, 0, 0)),   # context rows
            pl.BlockSpec((TB, 1, S), lambda b, s: (b, 0, 0)),   # weight rows
        ],
        out_shape=[
            jax.ShapeDtypeStruct((B, 1, H), jnp.float32),
            jax.ShapeDtypeStruct((B, 1, S), jnp.float32),
        ],
        scratch_shapes=[
            pltpu.VMEM((TB, 1, 1), jnp.float32),   # running max
            pltpu.VMEM((TB, 1, 1), jnp.float32),   # running denom
            pltpu.VMEM((TB, 1, H), jnp.float32),   # running weighted-key sum
            pltpu.VMEM((TB, 1, S), jnp.float32),   # raw scores, contiguous
        ],
        compiler_params=pltpu.CompilerParams(
            dimension_semantics=("parallel", "arbitrary"),
            vmem_limit_bytes=vmem_limit,
            allow_input_fusion=[False, True, False, False, False],
        ),
    )

    context, weights = kernel(wq, keys_bsh, ua_wt, ua_b2, va_row)
    return context, weights


if __name__ == "__main__":
    B, S, H = 4, 8, 32
    key = jax.random.PRNGKey(0)
    ks = jax.random.split(key, 8)
    bound = 1.0 / (H ** 0.5)            # PyTorch Linear default init range

    wa_w = jax.random.uniform(ks[0], (H, H), jnp.float32, -bound, bound)
    wa_b = jax.random.uniform(ks[1], (H,), jnp.float32, -bound, bound)
    ua_w = jax.random.uniform(ks[2], (H, H), jnp.float32, -bound, bound)
    ua_b = jax.random.uniform(ks[3], (H,), jnp.float32, -bound, bound)
    va_w = jax.random.uniform(ks[4], (1, H), jnp.float32, -bound, bound)
    va_b = jax.random.uniform(ks[5], (1,), jnp.float32, -bound, bound)

    query = jax.random.normal(ks[6], (1, B, H), jnp.float32)
    keys = jax.random.normal(ks[7], (S, B, H), jnp.float32)

    context, weights = attention_forward(
        query, keys, (wa_w, wa_b, ua_w, ua_b, va_w, va_b))
    jax.block_until_ready((context, weights))

    # Pure-JAX reference mirroring the PyTorch forward op-for-op, evaluated (in
    # f32) on the same bf16-quantized keys / Ua weights the kernel consumes, so
    # the check isolates kernel correctness from bf16 input rounding.  It keeps
    # the Va bias, showing that dropping it in the kernel is a math no-op.
    keys_q = keys.astype(jnp.bfloat16).astype(jnp.float32)
    ua_w_q = ua_w.astype(jnp.bfloat16).astype(jnp.float32)

    def ref(query, keys_in):
        sc = (jnp.tanh(query @ wa_w.T + wa_b + keys_in @ ua_w_q.T + ua_b)
              @ va_w.T + va_b)
        sc = jnp.squeeze(sc)[:, None, :]        # .squeeze().unsqueeze(1) -> (S,1,B)
        w = jax.nn.softmax(sc, axis=0)
        w = jnp.transpose(w, (2, 1, 0))         # (B, 1, S)
        kk = jnp.transpose(keys_in, (1, 0, 2))  # (B, S, H)
        return jnp.einsum('bos,bsh->boh', w, kk), w

    ctx_ref, wts_ref = ref(query, keys_q)
    assert context.shape == (B, 1, H) and weights.shape == (B, 1, S)
    assert jnp.allclose(weights, wts_ref, atol=1e-2, rtol=1e-2), \
        float(jnp.max(jnp.abs(weights - wts_ref)))
    assert jnp.allclose(context, ctx_ref, atol=3e-2, rtol=3e-2), \
        float(jnp.max(jnp.abs(context - ctx_ref)))

    print("KERNEL_OK")
</pallas_src>

<mosaic_0001>
module attributes {stable_mosaic.version = 11 : i64} {
  func.func @_attention_kernel(%arg0: i32, %arg1: i32, %arg2: memref<2x1x32xf32, #tpu.memory_space<vmem>>, %arg3: memref<2x8x32xbf16, #tpu.memory_space<vmem>>, %arg4: memref<32x32xbf16, #tpu.memory_space<vmem>>, %arg5: memref<1x32xf32, #tpu.memory_space<vmem>>, %arg6: memref<1x32xf32, #tpu.memory_space<vmem>>, %arg7: memref<2x1x32xf32, #tpu.memory_space<vmem>>, %arg8: memref<2x1x8xf32, #tpu.memory_space<vmem>>, %arg9: memref<2x1x1xf32, #tpu.memory_space<vmem>>, %arg10: memref<2x1x1xf32, #tpu.memory_space<vmem>>, %arg11: memref<2x1x32xf32, #tpu.memory_space<vmem>>, %arg12: memref<2x1x8xf32, #tpu.memory_space<vmem>>) attributes {dimension_semantics = [#tpu.dimension_semantics<parallel>, #tpu.dimension_semantics<arbitrary>], iteration_bounds = array<i64: 2, 1>, scalar_prefetch = 0 : i64, scratch_operands = 4 : i64, tpu.core_type = #tpu.core_type<tc>, window_params = [{transform_indices = @transform_0, window_bounds = array<i64: 2, 1, 32>}, {transform_indices = @transform_1, window_bounds = array<i64: 2, 8, 32>}, {pipeline_mode = #tpu.pipeline_mode<synchronous>, transform_indices = @transform_2, window_bounds = array<i64: 32, 32>}, {pipeline_mode = #tpu.pipeline_mode<synchronous>, transform_indices = @transform_3, window_bounds = array<i64: 1, 32>}, {pipeline_mode = #tpu.pipeline_mode<synchronous>, transform_indices = @transform_4, window_bounds = array<i64: 1, 32>}, {transform_indices = @transform_5, window_bounds = array<i64: 2, 1, 32>}, {transform_indices = @transform_6, window_bounds = array<i64: 2, 1, 8>}]} {
    %c0_i32 = arith.constant 0 : i32
    %0 = arith.cmpi eq, %arg1, %c0_i32 : i32
    %1 = arith.extui %0 : i1 to i32
    %c0_i32_0 = arith.constant 0 : i32
    %2 = arith.cmpi ne, %1, %c0_i32_0 : i32
    scf.if %2 {
      %cst_39 = arith.constant 0xFF800000 : f32
      %47 = vector.broadcast %cst_39 : f32 to vector<2x1x1xf32>
      %c0_40 = arith.constant 0 : index
      %c0_41 = arith.constant 0 : index
      %c0_42 = arith.constant 0 : index
      %48 = vector.load %arg9[%c0_40, %c0_41, %c0_42] : memref<2x1x1xf32, #tpu.memory_space<vmem>>, vector<2x1x1xf32>
      tpu.vector_store %arg9[%c0_40, %c0_41, %c0_42], %47 {strides = array<i32>} : memref<2x1x1xf32, #tpu.memory_space<vmem>>, vector<2x1x1xf32>,
      %cst_43 = arith.constant 0.000000e+00 : f32
      %49 = vector.broadcast %cst_43 : f32 to vector<2x1x1xf32>
      %c0_44 = arith.constant 0 : index
      %c0_45 = arith.constant 0 : index
      %c0_46 = arith.constant 0 : index
      %50 = vector.load %arg10[%c0_44, %c0_45, %c0_46] : memref<2x1x1xf32, #tpu.memory_space<vmem>>, vector<2x1x1xf32>
      tpu.vector_store %arg10[%c0_44, %c0_45, %c0_46], %49 {strides = array<i32>} : memref<2x1x1xf32, #tpu.memory_space<vmem>>, vector<2x1x1xf32>,
      %cst_47 = arith.constant 0.000000e+00 : f32
      %51 = vector.broadcast %cst_47 : f32 to vector<2x1x32xf32>
      %c0_48 = arith.constant 0 : index
      %c0_49 = arith.constant 0 : index
      %c0_50 = arith.constant 0 : index
      %52 = vector.load %arg11[%c0_48, %c0_49, %c0_50] : memref<2x1x32xf32, #tpu.memory_space<vmem>>, vector<2x1x32xf32>
      tpu.vector_store %arg11[%c0_48, %c0_49, %c0_50], %51 {strides = array<i32>} : memref<2x1x32xf32, #tpu.memory_space<vmem>>, vector<2x1x32xf32>,
    } else {
    }
    %c0 = arith.constant 0 : index
    %c0_1 = arith.constant 0 : index
    %c0_2 = arith.constant 0 : index
    %3 = vector.load %arg3[%c0, %c0_1, %c0_2] : memref<2x8x32xbf16, #tpu.memory_space<vmem>>, vector<2x8x32xbf16>
    %4 = vector.shape_cast %3 : vector<2x8x32xbf16> to vector<16x32xbf16>
    %c0_3 = arith.constant 0 : index
    %c0_4 = arith.constant 0 : index
    %5 = vector.load %arg4[%c0_3, %c0_4] : memref<32x32xbf16, #tpu.memory_space<vmem>>, vector<32x32xbf16>
    %cst = arith.constant dense<0.000000e+00> : vector<16x32xf32>
    %6 = tpu.matmul %4, %5, %cst {dimension_numbers = #tpu.dot_dimension_numbers<[1], [0], [0], [1], [0, 0, 1, 1], [], []>} : vector<16x32xbf16>, vector<32x32xbf16>, vector<16x32xf32> -> vector<16x32xf32>
    %c0_5 = arith.constant 0 : index
    %c0_6 = arith.constant 0 : index
    %7 = vector.load %arg5[%c0_5, %c0_6] : memref<1x32xf32, #tpu.memory_space<vmem>>, vector<1x32xf32>
    %8 = vector.broadcast %7 : vector<1x32xf32> to vector<16x32xf32>
    %9 = arith.addf %6, %8 : vector<16x32xf32>
    %10 = vector.shape_cast %9 : vector<16x32xf32> to vector<2x8x32xf32>
    %c0_7 = arith.constant 0 : index
    %c0_8 = arith.constant 0 : index
    %c0_9 = arith.constant 0 : index
    %11 = vector.load %arg2[%c0_7, %c0_8, %c0_9] : memref<2x1x32xf32, #tpu.memory_space<vmem>>, vector<2x1x32xf32>
    %12 = vector.broadcast %11 : vector<2x1x32xf32> to vector<2x8x32xf32>
    %13 = arith.addf %12, %10 : vector<2x8x32xf32>
    %14 = math.tanh %13 : vector<2x8x32xf32>
    %c0_10 = arith.constant 0 : index
    %c0_11 = arith.constant 0 : index
    %15 = vector.load %arg6[%c0_10, %c0_11] : memref<1x32xf32, #tpu.memory_space<vmem>>, vector<1x32xf32>
    %16 = vector.shape_cast %15 : vector<1x32xf32> to vector<1x1x32xf32>
    %17 = vector.shape_cast %16 : vector<1x1x32xf32> to vector<1x1x32xf32>
    %18 = vector.broadcast %17 : vector<1x1x32xf32> to vector<2x1x32xf32>
    "tpu.trace_start"() <{level = 10 : i32, message = "boh,bth->bot"}> : () -> ()
    %cst_12 = arith.constant dense<0.000000e+00> : vector<2x1x8xf32>
    %19 = tpu.matmul %18, %14, %cst_12 {dimension_numbers = #tpu.dot_dimension_numbers<[2], [2], [1], [1], [0, 0, 0, 1, 1, 1], [0], [0]>} : vector<2x1x32xf32>, vector<2x8x32xf32>, vector<2x1x8xf32> -> vector<2x1x8xf32>
    "tpu.trace_stop"() : () -> ()
    %c0_13 = arith.constant 0 : index
    %c0_14 = arith.constant 0 : index
    %c0_15 = arith.constant 0 : index
    %20 = vector.load %arg9[%c0_13, %c0_14, %c0_15] : memref<2x1x1xf32, #tpu.memory_space<vmem>>, vector<2x1x1xf32>
    %cst_16 = arith.constant dense<0xFF800000> : vector<2x1xf32>
    %21 = vector.multi_reduction <maximumf>, %19, %cst_16 [2] : vector<2x1x8xf32> to vector<2x1xf32>
    %22 = vector.shape_cast %21 : vector<2x1xf32> to vector<2x1x1xf32>
    %23 = arith.maximumf %20, %22 : vector<2x1x1xf32>
    %24 = arith.subf %20, %23 : vector<2x1x1xf32>
    %25 = math.exp %24 : vector<2x1x1xf32>
    %26 = vector.broadcast %23 : vector<2x1x1xf32> to vector<2x1x8xf32>
    %27 = arith.subf %19, %26 : vector<2x1x8xf32>
    %28 = math.exp %27 : vector<2x1x8xf32>
    %c0_17 = arith.constant 0 : index
    %c0_18 = arith.constant 0 : index
    %c0_19 = arith.constant 0 : index
    %29 = vector.load %arg10[%c0_17, %c0_18, %c0_19] : memref<2x1x1xf32, #tpu.memory_space<vmem>>, vector<2x1x1xf32>
    %30 = arith.mulf %25, %29 : vector<2x1x1xf32>
    %cst_20 = arith.constant dense<0.000000e+00> : vector<2x1xf32>
    %31 = vector.multi_reduction <add>, %28, %cst_20 [2] : vector<2x1x8xf32> to vector<2x1xf32>
    %32 = vector.shape_cast %31 : vector<2x1xf32> to vector<2x1x1xf32>
    %33 = arith.addf %30, %32 : vector<2x1x1xf32>
    %c0_21 = arith.constant 0 : index
    %c0_22 = arith.constant 0 : index
    %c0_23 = arith.constant 0 : index
    %34 = vector.load %arg10[%c0_21, %c0_22, %c0_23] : memref<2x1x1xf32, #tpu.memory_space<vmem>>, vector<2x1x1xf32>
    tpu.vector_store %arg10[%c0_21, %c0_22, %c0_23], %33 {strides = array<i32>} : memref<2x1x1xf32, #tpu.memory_space<vmem>>, vector<2x1x1xf32>,
    %c0_24 = arith.constant 0 : index
    %c0_25 = arith.constant 0 : index
    %c0_26 = arith.constant 0 : index
    %35 = vector.load %arg11[%c0_24, %c0_25, %c0_26] : memref<2x1x32xf32, #tpu.memory_space<vmem>>, vector<2x1x32xf32>
    %36 = vector.broadcast %25 : vector<2x1x1xf32> to vector<2x1x32xf32>
    %37 = arith.mulf %36, %35 : vector<2x1x32xf32>
    %38 = arith.truncf %28 : vector<2x1x8xf32> to vector<2x1x8xbf16>
    "tpu.trace_start"() <{level = 10 : i32, message = "bot,bth->boh"}> : () -> ()
    %cst_27 = arith.constant dense<0.000000e+00> : vector<2x1x32xf32>
    %39 = tpu.matmul %38, %3, %cst_27 {dimension_numbers = #tpu.dot_dimension_numbers<[2], [1], [1], [2], [0, 0, 0, 1, 1, 2], [0], [0]>} : vector<2x1x8xbf16>, vector<2x8x32xbf16>, vector<2x1x32xf32> -> vector<2x1x32xf32>
    "tpu.trace_stop"() : () -> ()
    %40 = arith.addf %37, %39 : vector<2x1x32xf32>
    %c0_28 = arith.constant 0 : index
    %c0_29 = arith.constant 0 : index
    %c0_30 = arith.constant 0 : index
    %41 = vector.load %arg11[%c0_28, %c0_29, %c0_30] : memref<2x1x32xf32, #tpu.memory_space<vmem>>, vector<2x1x32xf32>
    tpu.vector_store %arg11[%c0_28, %c0_29, %c0_30], %40 {strides = array<i32>} : memref<2x1x32xf32, #tpu.memory_space<vmem>>, vector<2x1x32xf32>,
    %c0_31 = arith.constant 0 : index
    %c0_32 = arith.constant 0 : index
    %c0_33 = arith.constant 0 : index
    %42 = vector.load %arg9[%c0_31, %c0_32, %c0_33] : memref<2x1x1xf32, #tpu.memory_space<vmem>>, vector<2x1x1xf32>
    tpu.vector_store %arg9[%c0_31, %c0_32, %c0_33], %23 {strides = array<i32>} : memref<2x1x1xf32, #tpu.memory_space<vmem>>, vector<2x1x1xf32>,
    %c0_34 = arith.constant 0 : index
    %c0_35 = arith.constant 0 : index
    %c0_36 = arith.constant 0 : index
    %43 = vector.load %arg12[%c0_34, %c0_35, %c0_36] : memref<2x1x8xf32, #tpu.memory_space<vmem>>, vector<2x1x8xf32>
    tpu.vector_store %arg12[%c0_34, %c0_35, %c0_36], %19 {strides = array<i32>} : memref<2x1x8xf32, #tpu.memory_space<vmem>>, vector<2x1x8xf32>,
    %c0_i32_37 = arith.constant 0 : i32
    %44 = arith.cmpi eq, %arg1, %c0_i32_37 : i32
    %45 = arith.extui %44 : i1 to i32
    %c0_i32_38 = arith.constant 0 : i32
    %46 = arith.cmpi ne, %45, %c0_i32_38 : i32
    scf.if %46 {
      %c0_39 = arith.constant 0 : index
      %c0_40 = arith.constant 0 : index
      %c0_41 = arith.constant 0 : index
      %47 = vector.load %arg10[%c0_39, %c0_40, %c0_41] : memref<2x1x1xf32, #tpu.memory_space<vmem>>, vector<2x1x1xf32>
      %48 = tpu.reciprocal %47 : vector<2x1x1xf32> -> vector<2x1x1xf32>
      %c0_42 = arith.constant 0 : index
      %c0_43 = arith.constant 0 : index
      %c0_44 = arith.constant 0 : index
      %49 = vector.load %arg11[%c0_42, %c0_43, %c0_44] : memref<2x1x32xf32, #tpu.memory_space<vmem>>, vector<2x1x32xf32>
      %50 = vector.broadcast %48 : vector<2x1x1xf32> to vector<2x1x32xf32>
      %51 = arith.mulf %49, %50 : vector<2x1x32xf32>
      %c0_45 = arith.constant 0 : index
      %c0_46 = arith.constant 0 : index
      %c0_47 = arith.constant 0 : index
      %52 = vector.load %arg7[%c0_45, %c0_46, %c0_47] : memref<2x1x32xf32, #tpu.memory_space<vmem>>, vector<2x1x32xf32>
      tpu.vector_store %arg7[%c0_45, %c0_46, %c0_47], %51 {strides = array<i32>} : memref<2x1x32xf32, #tpu.memory_space<vmem>>, vector<2x1x32xf32>,
      %c0_48 = arith.constant 0 : index
      %c0_49 = arith.constant 0 : index
      %c0_50 = arith.constant 0 : index
      %53 = vector.load %arg12[%c0_48, %c0_49, %c0_50] : memref<2x1x8xf32, #tpu.memory_space<vmem>>, vector<2x1x8xf32>
      %c0_51 = arith.constant 0 : index
      %c0_52 = arith.constant 0 : index
      %c0_53 = arith.constant 0 : index
      %54 = vector.load %arg9[%c0_51, %c0_52, %c0_53] : memref<2x1x1xf32, #tpu.memory_space<vmem>>, vector<2x1x1xf32>
      %55 = vector.broadcast %54 : vector<2x1x1xf32> to vector<2x1x8xf32>
      %56 = arith.subf %53, %55 : vector<2x1x8xf32>
      %57 = math.exp %56 : vector<2x1x8xf32>
      %58 = vector.broadcast %48 : vector<2x1x1xf32> to vector<2x1x8xf32>
      %59 = arith.mulf %57, %58 : vector<2x1x8xf32>
      %c0_54 = arith.constant 0 : index
      %c0_55 = arith.constant 0 : index
      %c0_56 = arith.constant 0 : index
      %60 = vector.load %arg8[%c0_54, %c0_55, %c0_56] : memref<2x1x8xf32, #tpu.memory_space<vmem>>, vector<2x1x8xf32>
      tpu.vector_store %arg8[%c0_54, %c0_55, %c0_56], %59 {strides = array<i32>} : memref<2x1x8xf32, #tpu.memory_space<vmem>>, vector<2x1x8xf32>,
    } else {
    }
    return
  }
  func.func @transform_0(%arg0: i32, %arg1: i32) -> (i32, i32, i32) {
    %c0_i32 = arith.constant 0 : i32
    %c0_i32_0 = arith.constant 0 : i32
    %c0_i32_1 = arith.constant 0 : i32
    return %arg0, %c0_i32, %c0_i32_0 : i32, i32, i32
  }
  func.func @transform_1(%arg0: i32, %arg1: i32) -> (i32, i32, i32) {
    %c0_i32 = arith.constant 0 : i32
    %c0_i32_0 = arith.constant 0 : i32
    return %arg0, %arg1, %c0_i32 : i32, i32, i32
  }
  func.func @transform_2(%arg0: i32, %arg1: i32) -> (i32, i32) {
    %c0_i32 = arith.constant 0 : i32
    %c0_i32_0 = arith.constant 0 : i32
    %c0_i32_1 = arith.constant 0 : i32
    return %c0_i32, %c0_i32_0 : i32, i32
  }
  func.func @transform_3(%arg0: i32, %arg1: i32) -> (i32, i32) {
    %c0_i32 = arith.constant 0 : i32
    %c0_i32_0 = arith.constant 0 : i32
    %c0_i32_1 = arith.constant 0 : i32
    return %c0_i32, %c0_i32_0 : i32, i32
  }
  func.func @transform_4(%arg0: i32, %arg1: i32) -> (i32, i32) {
    %c0_i32 = arith.constant 0 : i32
    %c0_i32_0 = arith.constant 0 : i32
    %c0_i32_1 = arith.constant 0 : i32
    return %c0_i32, %c0_i32_0 : i32, i32
  }
  func.func @transform_5(%arg0: i32, %arg1: i32) -> (i32, i32, i32) {
    %c0_i32 = arith.constant 0 : i32
    %c0_i32_0 = arith.constant 0 : i32
    %c0_i32_1 = arith.constant 0 : i32
    return %arg0, %c0_i32, %c0_i32_0 : i32, i32, i32
  }
  func.func @transform_6(%arg0: i32, %arg1: i32) -> (i32, i32, i32) {
    %c0_i32 = arith.constant 0 : i32
    %c0_i32_0 = arith.constant 0 : i32
    %c0_i32_1 = arith.constant 0 : i32
    return %arg0, %c0_i32, %c0_i32_0 : i32, i32, i32
  }
}

</mosaic_0001>

<bundles_post_ra>
// kernel: tpu_custom_call.1
= control target key start
LH: loop header
LB: loop body
LE: loop exit
PB: predicated region body
PF: predicated region fallthrough
CT: control target
= control target key end

     0   :  { %s1886_s0 = inlined_call_operand.hbm [shape: f32[4,1,32], index: 0, kind: input, shape index: {}]   ;;  %s1887_s1 = inlined_call_operand.hbm [shape: bf16[4,8,32], index: 1, kind: input, shape index: {}]   ;;  %s1888_s2 = inlined_call_operand.hbm [shape: bf16[32,32], index: 2, kind: input, shape index: {}]   ;;  %s1889_s3 = inlined_call_operand.vmem [shape: f32[1,32], index: 3, kind: input, shape index: {}]   ;;  %s1890_s4 = inlined_call_operand.vmem [shape: f32[1,32], index: 4, kind: input, shape index: {}]   ;;  %s1891_s5 = inlined_call_operand.hbm [shape: f32[4,1,32], index: 5, kind: output, shape index: {0}]   ;;  %s1892_s6 = inlined_call_operand.hbm [shape: f32[4,1,8], index: 6, kind: output, shape index: {1}]  }
   0x1   :  { %1901 = sst [smem:[#allocation24_spill]] %s1886_s0 }
   0x2   :  { %1902 = sst [smem:[#allocation25_spill]] %s1888_s2 }
   0x3   :  { %12 = vsyncpa [#allocation7], 0 }
   0x4   :  { %14 = vsyncpa [#allocation7 + $0x1], 0 }
   0x5   :  { %15 = vsyncpa [#allocation10], 0 }
   0x6   :  { %17 = vsyncpa [#allocation10 + $0x1], 0 }
   0x7   :  { %18 = vsyncpa [#allocation8], 0 }
   0x8   :  { %20 = vsyncpa [#allocation8 + $0x1], 0 }
   0x9   :  { %21 = vsyncpa [#allocation14], 0 }
   0xa   :  { %23 = vsyncpa [#allocation14 + $0x1], 0  ;;  %s1501_s21 = smov 0   ;;  %s1503_s22 = smov 0  }
   0xb   :  { %s1505_s23 = smov 0   ;;  %s1507_s24 = smov 0  }
   0xc   :  { %s1509_s25 = smov 0   ;;  %s1511_s26 = smov 0  }
   0xd LB: > { %1903 = sst [smem:[#allocation20_spill]] %s1437_s23  ;;  %s1532_s27 = sadd.s32 4294967295, %s1449_s26   ;;  %s1449_s26 = sphi %s1511_s26, %s29_s26   ;;  %s1445_s25 = sphi %s1509_s25, %s1933_s25   ;;  %s1441_s24 = sphi %s1507_s24, %s1932_s24   ;;  %s1437_s23 = sphi %s1505_s23, %s1928_s23   ;;  %s1433_s22 = sphi %s1503_s22, %s1931_s22   ;;  %s1429_s21 = sphi %s1501_s21, %s1930_s21  }
   0xe   : > { %s1039_s28 = sadd.s32 4294967294, %s1449_s26   ;;  %p61_p0 = scmp.ne.s32.totalorder %s1433_s22, %s1429_s21 }
   0xf   : > { %p1893_p1 = scmp.eq.s32.totalorder %s1532_s27, 0  ;;  %p182_p3 = scmp.eq.s32.totalorder %s1039_s28, 1 }
  0x10   : > { %p1040_p5 = scmp.ge.s32.totalorder %s1449_s26, 1  ;;  %p215_p7 = scmp.lt.s32.totalorder %s1449_s26, 3 }
  0x11   : > { %p1541_p4 = por %p1893_p1, %p61_p0  ;;  %p1546_p6 = por %p182_p3, %p61_p0 }
  0x12   : > { %p1551_p8 = pnand %p1040_p5, %p215_p7  ;;  %s1451_s8 = smov [#allocation11]  }
  0x13   : > { %s1904_s29 = scalar_select %p1541_p4, 1, 0 }
  0x14   : > { %s1905_s30 = scalar_select %p1546_p6, 1, 0 }
  0x15   : > { %s1907_s7 = scalar_select %p1551_p8, 1, 0 }
  0x16   : > { %1906 = sst [smem:[#allocation21_spill]] %s1905_s30  ;;  %s227_s9 = sshll.u32 %s1451_s8, 4  ;;  %s228_s9 = int_to_ptr.vmem [resolvable:$true] %s227_s9 }
  0x17   : > { %p1133_p9 = pneg %p1551_p8  ;;  %s41_s11 = sadd.s32 1, %s1445_s25 }
  0x18   : > { %s1909_s2 = sld [smem:[#allocation25_spill]] }
  0x19   : > { %p1560_p11 = pnand %p1133_p9, %p1893_p1 }
  0x1b   : > { %p1241_p13 = pneg %p1560_p11 }
  0x1e   : > { %s1239_s14 = scalar_lea.hbm %s1909_s2, 256 }
  0x1f   : > { %p1240_p12 = scmp.ne.s32.totalorder %s1909_s2, %s1239_s14  ;;  %p1246_p5 = scmp.lt.u32.totalorder %s1239_s14, %s1909_s2 }
  0x21   : > { %p1242_p0 = pnand %p1241_p13, %p1240_p12 }
  0x23   : > { %p1243_p3 = pneg %p1242_p0 }
  0x25   : > { %p1248_p7 = pnand %p1246_p5, %p1243_p3 }
  0x27   : > { %1251 = shalt.err (!%p1248_p7)
}
  0x28   : > { %s1252_s19 = scalar_lea.vmem %s228_s9, 256  ;;  %p1260_p2 = scmp.lt.s32.totalorder %s228_s9, %s228_s9 }
  0x29   : > { %p1253_p9 = scmp.ne.s32.totalorder %s228_s9, %s1252_s19  ;;  %p1261_p6 = scmp.lt.s32.totalorder %s1252_s19, %s1252_s19 }
  0x2b   : > { %p1255_p10 = pnand %p1253_p9, %p1241_p13  ;;  %p1262_p4 = por %p1261_p6, %p1260_p2 }
  0x2d   : > { %p1256_p1 = pneg %p1255_p10 }
  0x2f   : > { %p1263_p8 = pnand %p1262_p4, %p1256_p1 }
  0x31   : > { %1266 = shalt.err (!%p1263_p8)
}
  0x32   : > { %s1896_s20 = smov 64   ;;  %s1897_s28 = smov 4  }
  0x33   : > { %1136 = dma.hbm_to_vmem [thread:$0]  (!%p1560_p11), %s1909_s2, 256, %s228_s9, [#allocation10], %s1896_s20, %s1896_s20, %s1897_s28  }
  0x34   : > { %p43_p1 = scmp.ge.s32.totalorder %s41_s11, 2  ;;  %s48_s13 = sadd.s32 1, %s1437_s23 }
  0x35   : > { %p55_p2 = scmp.ne.s32.totalorder %s1437_s23, %s1433_s22  ;;  %p56_p4 = scmp.eq.s32.totalorder %s1449_s26, 0 }
  0x36   : > { %s1935_s11 = smov (%p43_p1, %s41_s11), 0  ;;  %p1912_p8 = scmp.eq.s32.totalorder %s1532_s27, 1 }
  0x37   : > { %1910 = sst [smem:[#allocation22_spill]] %s1935_s11  ;;  %p1590_p6 = por %p56_p4, %p55_p2 }
  0x38   : > { %p1596_p10 = por %p1912_p8, %p55_p2  ;;  %s45_s15 = ssub.s32 %s1445_s25, %s1935_s11 }
  0x39   : > { %p1152_p11 = scmp.lt.s32.totalorder %s1449_s26, 2  ;;  %p46_p12 = scmp.eq.s32.totalorder %s45_s15, 0 }
  0x3a   : > { %s1604_s9 = sand.u32 1, %s1437_s23   ;;  %s1076_s18 = sshll.u32 %s1445_s25, 5 }
  0x3b   : > { %s1043_s16 = sshll.u32 %s1604_s9, 1  ;;  %s1915_s0 = sld [smem:[#allocation24_spill]] }
  0x3c   : > { %s1608_s17 = scalar_select %p46_p12, %s1437_s23, %s48_s13  }
  0x3d   : > { %s251_s20 = scalar_lea.vmem [#allocation6], %s1043_s16  ;;  %p1620_p13 = pnand %p1152_p11, %p1590_p6 }
  0x3e   : > { %1914 = sst [smem:[#allocation23_spill]] %s1608_s17  ;;  %s258_s28 = sshll.u32 %s251_s20, 4  ;;  %s1616_s28 = int_to_ptr.vmem [resolvable:$true] %s258_s28 }
  0x3f   : > { %s248_s2 = scalar_lea.sflag [#allocation7], %s1604_s9  ;;  %p1269_p3 = pneg %p1620_p13 }
  0x41   : > { %s1614_s12 = scalar_lea.hbm %s1915_s0, %s1076_s18  ;;  %s1272_s14 = scalar_lea.hbm %s1915_s0, 64 }
  0x42   : > { %s1267_s19 = scalar_lea.hbm %s1614_s12, 32  ;;  %p1273_p9 = scmp.lt.u32.totalorder %s1614_s12, %s1915_s0 }
  0x43   : > { %p1268_p0 = scmp.ne.s32.totalorder %s1614_s12, %s1267_s19  ;;  %p1274_p1 = scmp.lt.u32.totalorder %s1272_s14, %s1267_s19 }
  0x44   : > { %p1276_p4 = scmp.lt.u32.totalorder %s1267_s19, %s1614_s12 }
  0x45   : > { %p1270_p5 = pnand %p1269_p3, %p1268_p0  ;;  %p1275_p2 = por %p1274_p1, %p1273_p9 }
  0x47   : > { %p1271_p7 = pneg %p1270_p5  ;;  %p1277_p6 = por %p1276_p4, %p1275_p2 }
  0x49   : > { %p1278_p8 = pnand %p1277_p6, %p1271_p7 }
  0x4b   : > { %1281 = shalt.err (!%p1278_p8)
}
  0x4c   : > { %s1282_s13 = scalar_lea.vmem %s1616_s28, 32  ;;  %s1454_s20 = smov [#allocation6]  }
  0x4d   : > { %p1283_p11 = scmp.ne.s32.totalorder %s1616_s28, %s1282_s13  ;;  %s1287_s16 = sshll.u32 %s1454_s20, 4  ;;  %s1288_s16 = int_to_ptr.vmem [resolvable:$false] %s1287_s16 }
  0x4e   : > { %s1289_s18 = scalar_lea.vmem %s1288_s16, 64  ;;  %p1290_p5 = scmp.lt.s32.totalorder %s1616_s28, %s1288_s16 }
  0x4f   : > { %p1285_p12 = pnand %p1283_p11, %p1269_p3  ;;  %p1291_p9 = scmp.lt.s32.totalorder %s1289_s18, %s1282_s13 }
  0x51   : > { %p1286_p0 = pneg %p1285_p12  ;;  %p1292_p1 = por %p1291_p9, %p1290_p5 }
  0x53   : > { %p1293_p2 = pnand %p1292_p1, %p1286_p0 }
  0x55   : > { %1296 = shalt.err (!%p1293_p2)
}
  0x56   : > { %s1455_s19 = smov 16   ;;  %s1456_s14 = smov 1  }
  0x57   : > { %1140 = dma.hbm_to_vmem [thread:$0]  (!%p1620_p13), %s1614_s12, 32, %s1616_s28, %s248_s2, %s1455_s19, %s1455_s19, %s1456_s14  }
  0x58   : > { %s1046_s8 = sshll.u32 %s1604_s9, 3  ;;  %s1077_s20 = sshll.u32 %s1445_s25, 7 }
  0x59   : > { %s1658_s18 = scalar_lea.hbm %s1887_s1, %s1077_s20  ;;  %s272_s0 = scalar_lea.vmem [#allocation9], %s1046_s8 }
  0x5a   : > { %s280_s11 = sshll.u32 %s272_s0, 4  ;;  %s1917_s17 = sand.u32 1, %s1449_s26   ;;  %s1660_s11 = int_to_ptr.vmem [resolvable:$true] %s280_s11 }
  0x5b   : > { %s1664_s23 = scalar_lea.sflag [#allocation10], %s1917_s17  ;;  %s1297_s30 = scalar_lea.hbm %s1658_s18, 128 }
  0x5c   : > { %p1298_p7 = scmp.ne.s32.totalorder %s1658_s18, %s1297_s30  ;;  %s1302_s9 = scalar_lea.hbm %s1887_s1, 256 }
  0x5d   : > { %p1303_p8 = scmp.lt.u32.totalorder %s1658_s18, %s1887_s1  ;;  %p1304_p11 = scmp.lt.u32.totalorder %s1302_s9, %s1297_s30 }
  0x5e   : > { %p1300_p4 = pnand %p1298_p7, %p1269_p3  ;;  %p1306_p0 = scmp.lt.u32.totalorder %s1297_s30, %s1658_s18 }
  0x5f   : > { %p1305_p12 = por %p1304_p11, %p1303_p8 }
  0x60   : > { %p1301_p6 = pneg %p1300_p4 }
  0x61   : > { %p1307_p5 = por %p1306_p0, %p1305_p12 }
  0x63   : > { %p1308_p9 = pnand %p1307_p5, %p1301_p6 }
  0x65   : > { %1311 = shalt.err (!%p1308_p9)
}
  0x66   : > { %s1312_s0 = scalar_lea.vmem %s1660_s11, 128  ;;  %s1457_s17 = smov [#allocation9]  }
  0x67   : > { %p1313_p1 = scmp.ne.s32.totalorder %s1660_s11, %s1312_s0  ;;  %s1317_s14 = sshll.u32 %s1457_s17, 4  ;;  %s1318_s14 = int_to_ptr.vmem [resolvable:$false] %s1317_s14 }
  0x68   : > { %s1319_s8 = scalar_lea.vmem %s1318_s14, 256  ;;  %p1320_p4 = scmp.lt.s32.totalorder %s1660_s11, %s1318_s14 }
  0x69   : > { %p1315_p2 = pnand %p1313_p1, %p1269_p3  ;;  %p1321_p8 = scmp.lt.s32.totalorder %s1319_s8, %s1312_s0 }
  0x6b   : > { %p1316_p7 = pneg %p1315_p2  ;;  %p1322_p11 = por %p1321_p8, %p1320_p4 }
  0x6d   : > { %p1323_p12 = pnand %p1322_p11, %p1316_p7 }
  0x6f   : > { %1326 = shalt.err (!%p1323_p12)
}
  0x70   : > { %s1918_s30 = smov 4   ;;  %s1919_s20 = smov 64  }
  0x71   : > { %1143 = dma.hbm_to_vmem [thread:$0]  (!%p1620_p13), %s1658_s18, 128, %s1660_s11, %s1664_s23, %s1919_s20, %s1919_s20, %s1918_s30  }
  0x72   : > { %p1920_p3 = scmp.ne.s32.totalorder %s1907_s7, 0 }
  0x73   : > { %s1696_s16 = sand.u32 (!%p1920_p3), 1, %s1433_s22   ;;  %p1921_p6 = scmp.ne.s32.totalorder (!%p1920_p3), %s1904_s29, 0 }
  0x74   : > { %292 = sbr.rel (%p1920_p3) target bundleno = 1211 (0x4bb), region = 40  ;;  %s1699_s13 = sshll.u32 (!%p1920_p3), %s1696_s16, 1 }
  0x75   : > { %s295_s15 = scalar_lea.sflag (!%p1920_p3), [#allocation7], %s1696_s16  ;;  %s298_s2 = scalar_lea.vmem (!%p1920_p3), [#allocation6], %s1699_s13 }
  0x7b   : > { %1408 = dma.done.wait (%p1921_p6), %s295_s15, 32  }
  0x7c   : > { %1410 = vsyncadd (%p1921_p6), %s295_s15, 4294967264  ;;  %s303_s23 = sand.u32 1, %s1532_s27   ;;  %s1051_s7 = sshll.u32 %s1696_s16, 3 }
  0x7d   : > { %s304_s11 = scalar_lea.sflag [#allocation10], %s303_s23  ;;  %s307_s18 = scalar_lea.vmem [#allocation9], %s1051_s7 }
  0x7e   : > { %1412 = dma.done.wait (%p1921_p6), %s304_s11, 128  }
  0x7f   : > { %1414 = vsyncadd (%p1921_p6), %s304_s11, 4294967168  ;;  %p1922_p13 = scmp.eq.s32.totalorder %s1532_s27, 0 }
  0x81   : > { %1416 = dma.done.wait (%p1922_p13), [#allocation10], 256   ;;  %p1923_p0 = pmov %p1922_p13 }
  0x82   : > { %v1458_v0 = vmov 0.0   ;;  %vm1459_vm0 = vmmov 0   ;;  %v1216_v1 = vld [vmem:[#allocation11] sm:$0xff]   ;;  %v1217_v2 = vld [vmem:[#allocation11 + $0x8] sm:$0xff]   ;;  %v1723_v3 = vld [vmem:[%s307_s18] sm:$0xf]  ;;  %v632_v38 = vlaneseq }
  0x83   : > { %1418 = vsyncadd (%p1923_p0), [#allocation10], 4294967040  ;;  %1091 = vmatprep.subr.bf16.mxu0 %v1458_v0  ;;  %1095 = vmatprep.mubr.msk.bf16.mxu0 %vm1459_vm0, %v1458_v0  ;;  %v1725_v4 = vld [vmem:[%s307_s18 + $0x4] sm:$0xf]  ;;  %vm397_vm1 = vcmask 261120   ;;  %vm359_vm2 = vcmask 0  }
  0x84   : > { %1099 = vmatprep.subr.mxu1 %v1458_v0  ;;  %1101 = vmatprep.mubr.msk.f32.mxu1 %vm1459_vm0, %v1458_v0  ;;  %v1056_v5 = vcombine.low %v1723_v3, %v1725_v4  ;;  %v1055_v6 = vld [vmem:[%s1889_s3] ss:$0 sm:$0xff]  ;;  %v1060_v8 = vld [vmem:[%s298_s2] ss:$0 sm:$0xff]  ;;  %v1061_v12 = vld [vmem:[%s298_s2 + $0x1] ss:$0 sm:$0xff] }
  0x85   : > { %1092 = vmatpush3.bf16.msra.mxu0 %v1216_v1  ;;  %v460_v18 = vld [vmem:[%s1890_s4] sm:$0x1]  ;;  %v1460_v20 = vmov -inf   ;;  %362 = vst.msk [vmem:[#allocation3] sm:$0x1] %vm359_vm2, %v1458_v0  ;;  %vm612_vm3 = vcmask 57344  }
  0x86   : > { %1093 = vmatprep.subr.bf16.mxu0 %v1458_v0  ;;  %360 = vst.msk [vmem:[#allocation2] sm:$0x1] %vm359_vm2, %v1460_v20  ;;  %361 = vst.msk [vmem:[#allocation2 + $0x1] sm:$0x1] %vm359_vm2, %v1460_v20  ;;  %v1461_v27 = vmov 0   ;;  %vm694_vm4 = vcmask 1043456  }
  0x87   : > { %363 = vst.msk [vmem:[#allocation3 + $0x1] sm:$0x1] %vm359_vm2, %v1458_v0  ;;  %1214 = vset.pattern.permute.xlu1 %v1461_v27  ;;  %1215 = vset.pattern.permute.xlu0 %v1461_v27  ;;  %v696_v36 = vsel %vm694_vm4, %v1723_v3, 0  ;;  %v742_v37 = vsel %vm694_vm4, %v1725_v4, 0  ;;  %v633_v39 = vshrl.u32 %v632_v38, 7  ;;  %vm690_vm5 = vcmask 64512  }
  0x88   : > { %vm364_vm6 = vcmask 253952   ;;  %s1078_s12 = sshll.u32 %s1441_s24, 5  ;;  %s342_s19 = scalar_lea.vmem [#allocation12], %s1699_s13 }
  0x89   : > { %1094 = vmatpush3.bf16.msra.mxu0 %v1217_v2  ;;  %v1768_v40 = vsub.s32 0, %v633_v39  ;;  %365 = vst.msk [vmem:[#allocation4] sm:$0x1] %vm364_vm6, %v1458_v0  ;;  %366 = vst.msk [vmem:[#allocation4 + $0x1] sm:$0x1] %vm364_vm6, %v1458_v0  ;;  %s349_s0 = scalar_lea.vmem [#allocation13], %s1699_s13  ;;  %s1796_s30 = scalar_lea.hbm %s1891_s5, %s1078_s12 }
  0x8a   : > { %1115 = vmatprep.subr.bf16.mxu0 %v1458_v0  ;;  %s875_s17 = sshll.u32 %s342_s19, 4  ;;  %s891_s20 = sshll.u32 %s349_s0, 4  ;;  %s1798_s17 = int_to_ptr.vmem [resolvable:$true] %s875_s17  ;;  %s1805_s20 = int_to_ptr.vmem [resolvable:$true] %s891_s20 }
  0x8b   : > { %s1803_s15 = scalar_lea.hbm %s1892_s6, %s1078_s12  ;;  %s857_s2 = scalar_lea.sflag [#allocation8], %s1696_s16 }
  0x8c   : > { %1096 = vmatmul.mubr.msk.bf16.vlgmr.msra.gmra.mrb[0].mxu0 %vm397_vm1, %v1056_v5  ;;  %v651_v61 = vld [vmem:[#allocation3] sm:$0x1]  ;;  %s1327_s23 = scalar_lea.vmem %s1798_s17, 32  ;;  %s1462_s7 = smov [#allocation12]  }
  0x8d   : > { %1117 = vmatprep.mubr.msk.bf16.mxu0 %vm1459_vm0, %v1458_v0  ;;  %v610_v28 = vld [vmem:[#allocation2] sm:$0x1]  ;;  %v611_v31 = vld [vmem:[#allocation2 + $0x1] sm:$0x1]  ;;  %1116 = vmatpush3.bf16.msra.mxu0 %v742_v37  ;;  %p1328_p5 = scmp.ne.s32.totalorder %s1798_s17, %s1327_s23  ;;  %s1331_s11 = sshll.u32 %s1462_s7, 4  ;;  %s1332_s11 = int_to_ptr.vmem [resolvable:$false] %s1331_s11 }
  0x8e   : > { %v652_v1 = vld [vmem:[#allocation3 + $0x1] sm:$0x1]  ;;  %s1333_s18 = scalar_lea.vmem %s1332_s11, 64  ;;  %p1334_p2 = scmp.lt.s32.totalorder %s1798_s17, %s1332_s11 }
  0x8f   : > { %p1329_p9 = pnand %p1328_p5, %p1596_p10  ;;  %p1335_p7 = scmp.lt.s32.totalorder %s1333_s18, %s1327_s23 }
  0x91   : > { %p1330_p1 = pneg %p1329_p9  ;;  %p1336_p4 = por %p1335_p7, %p1334_p2 }
  0x93   : > { %p1337_p8 = pnand %p1336_p4, %p1330_p1 }
 0x15f   : > { %v435_v7 = vpop.f32.mrb[0].mxu0 }
 0x160   : > { %v436_v9 = vadd.f32 %v1055_v6, %v435_v7  ;;  %v1097_v10 = vpop.f32.mrb[1].mxu0 }
 0x161   : > { %v438_v11 = vpop.f32.mrb[2].mxu0 }
 0x162   : > { %v456_v13 = vadd.f32 %v1060_v8, %v436_v9  ;;  %v439_v14 = vadd.f32 %v1055_v6, %v438_v11  ;;  %v1098_v15 = vpop.f32.mrb[3].mxu0 }
 0x164   : > { %1219 = vtanh.f32 %v456_v13  ;;  %v457_v16 = vadd.f32 %v1061_v12, %v439_v14  ;;  %v666_v13 = vld [vmem:[#allocation4] sm:$0x1] }
 0x166   : > { %1221 = vtanh.f32 %v457_v16 }
 0x16e   : > { %v1220_v17 = vpop.eup %1219 }
 0x16f   : > { %1100 = vmatpush3.xpose.msk.msra.mxu1 %vm397_vm1, %v1220_v17  ;;  %v667_v17 = vld [vmem:[#allocation4 + $0x1] sm:$0x1] }
 0x170   : > { %1104 = vmatprep.subr.mxu1 %v1458_v0  ;;  %v1222_v19 = vpop.eup %1221 }
 0x172   : > { %1102 = vmatmul.mubr.msk.f32.vlgmr.msra.gmra.mrb[0].mxu1 %vm397_vm1, %v460_v18 }
 0x173   : > { %1105 = vmatpush3.xpose.msk.msra.mxu1 %vm397_vm1, %v1222_v19  ;;  %1106 = vmatprep.mubr.msk.f32.mxu1 %vm1459_vm0, %v1458_v0 }
 0x174   : > { %1109 = vmatprep.subr.bf16.mxu1 %v1458_v0 }
 0x176   : > { %1107 = vmatmul.mubr.msk.f32.vlgmr.msra.gmra.mrb[2].mxu1 %vm397_vm1, %v460_v18 }
 0x177   : > { %1111 = vmatprep.mubr.msk.bf16.mxu1 %vm1459_vm0, %v1458_v0  ;;  %1110 = vmatpush3.bf16.msra.mxu1 %v696_v36 }
 0x245   : > { %v533_v21 = vpop.f32.mrb[0].mxu1 }
 0x246   : > { %791 = vst.msk [vmem:[#allocation5] sm:$0x1] %vm612_vm3, %v533_v21  ;;  %v1103_v22 = vpop.f32.mrb[1].mxu1  ;;  %v613_v23 = vsel %vm612_vm3, %v533_v21, -inf }
 0x247   : > { %614 = vmax.xlane.f32.xlu0 %v613_v23 }
 0x249   : > { %v606_v24 = vpop.f32.mrb[2].mxu1 }
 0x24a   : > { %792 = vst.msk [vmem:[#allocation5 + $0x1] sm:$0x1] %vm612_vm3, %v606_v24  ;;  %v1108_v25 = vpop.f32.mrb[3].mxu1  ;;  %v616_v26 = vsel %vm612_vm3, %v606_v24, -inf }
 0x24b   : > { %617 = vmax.xlane.f32.xlu0 %v616_v26 }
 0x2d4   : > { %v615_v29 = vpop.xlane.xlu0 %614 }
 0x2d5   : > { %v619_v30 = vmax.f32 %v610_v28, %v615_v29 }
 0x2d7   : > { %v621_v32 = vsub.f32 %v610_v28, %v619_v30  ;;  %789 = vst.msk [vmem:[#allocation2] sm:$0x1] %vm359_vm2, %v619_v30  ;;  %629 = vperm.xlu1 %1214, %v619_v30   ;;  %v824_v30 = vld [vmem:[#allocation5] sm:$0x1] }
 0x2d8   : > { %v618_v33 = vpop.xlane.xlu0 %617 }
 0x2d9   : > { %v620_v34 = vmax.f32 %v611_v31, %v618_v33  ;;  %v623_v55 = vmul.f32 1.442695, %v621_v32 }
 0x2db   : > { %v622_v35 = vsub.f32 %v611_v31, %v620_v34  ;;  %790 = vst.msk [vmem:[#allocation2 + $0x1] sm:$0x1] %vm359_vm2, %v620_v34  ;;  %638 = vperm.xlu1 %1214, %v620_v34   ;;  %v825_v34 = vld [vmem:[#allocation5 + $0x1] sm:$0x1] }
 0x2dd   : > { %v625_v56 = vmul.f32 1.442695, %v622_v35 }
 0x2de   : > { %v826_v58 = vld [vmem:[#allocation2] sm:$0x1] }
 0x2e2   : > { %v827_v57 = vld [vmem:[#allocation2 + $0x1] sm:$0x1] }
 0x356   : > { %v630_v41 = vpop.permute.xlu1 %629 }
 0x357   : > { %v635_v42 = vrot.slane %v630_v41, %v1768_v40 }
 0x359   : > { %v645_v43 = vsub.f32 %v533_v21, %v635_v42 }
 0x35a   : > { %v639_v44 = vpop.permute.xlu1 %638 }
 0x35b   : > { %v647_v45 = vmul.f32 1.442695, %v645_v43  ;;  %v644_v46 = vrot.slane %v639_v44, %v1768_v40 }
 0x35d   : > { %1223 = vpow2.f32 %v647_v45  ;;  %v646_v47 = vsub.f32 %v606_v24, %v644_v46 }
 0x35f   : > { %v649_v48 = vmul.f32 1.442695, %v646_v47 }
 0x361   : > { %1225 = vpow2.f32 %v649_v48 }
 0x362   : > { %1227 = vpow2.f32 %v623_v55 }
 0x363   : > { %1229 = vpow2.f32 %v625_v56 }
 0x367   : > { %v1224_v49 = vpop.eup %1223 }
 0x368   : > { %v655_v50 = vsel %vm612_vm3, %v1224_v49, 0.0  ;;  %v688_v51 = vpack.c.bf16 %v1224_v49, %v1224_v49 }
 0x369   : > { %656 = vadd.xlane.f32.xlu0 %v655_v50 }
 0x36a   : > { %1112 = vmatmul.mubr.msk.bf16.vlgmr.msra.gmra.mrb[4].mxu1 %vm690_vm5, %v688_v51 }
 0x36b   : > { %v1226_v52 = vpop.eup %1225 }
 0x36c   : > { %v658_v53 = vsel %vm612_vm3, %v1226_v52, 0.0  ;;  %v689_v54 = vpack.c.bf16 %v1226_v52, %v1226_v52  ;;  %v1228_v59 = vpop.eup %1227 }
 0x36d   : > { %659 = vadd.xlane.f32.xlu1 %v658_v53  ;;  %v1230_v60 = vpop.eup %1229  ;;  %v653_v62 = vmul.f32 %v1228_v59, %v651_v61 }
 0x36e   : > { %1118 = vmatmul.mubr.msk.bf16.vlgmr.msra.gmra.mrb[4].mxu0 %vm690_vm5, %v689_v54  ;;  %v654_v3 = vmul.f32 %v1230_v60, %v652_v1 }
 0x37e   : > { %839 = vperm.xlu1 %1214, %v827_v57  }
 0x37f   : > { %830 = vperm.xlu0 %1215, %v826_v58  }
 0x383   : > { %670 = vperm.xlu0 %1215, %v1228_v59  }
 0x387   : > { %679 = vperm.xlu0 %1215, %v1230_v60  }
 0x3f6   : > { %v657_v63 = vpop.xlane.xlu0 %656 }
 0x3f7   : > { %v661_v2 = vadd.f32 %v657_v63, %v653_v62 }
 0x3f9   : > { %664 = vst.msk [vmem:[#allocation3] sm:$0x1] %vm359_vm2, %v661_v2 }
 0x3fa   : > { %v660_v4 = vpop.xlane.xlu1 %659 }
 0x3fb   : > { %v662_v5 = vadd.f32 %v660_v4, %v654_v3 }
 0x3fd   : > { %665 = vst.msk [vmem:[#allocation3 + $0x1] sm:$0x1] %vm359_vm2, %v662_v5 }
 0x3fe   : > { %v831_v9 = vpop.permute.xlu0 %830  ;;  %v840_v29 = vpop.permute.xlu1 %839 }
 0x3ff   : > { %v836_v28 = vrot.slane %v831_v9, %v1768_v40  ;;  %v845_v32 = vrot.slane %v840_v29, %v1768_v40 }
 0x400   : > { %v796_v6 = vld [vmem:[#allocation3] sm:$0x1] }
 0x401   : > { %1231 = vrcp.f32 %v796_v6  ;;  %v846_v31 = vsub.f32 %v824_v30, %v836_v28  ;;  %v847_v35 = vsub.f32 %v825_v34, %v845_v32 }
 0x402   : > { %v671_v10 = vpop.permute.xlu0 %670 }
 0x403   : > { %v676_v11 = vrot.slane %v671_v10, %v1768_v40  ;;  %v848_v33 = vmul.f32 1.442695, %v846_v31  ;;  %v850_v36 = vmul.f32 1.442695, %v847_v35 }
 0x404   : > { %v797_v7 = vld [vmem:[#allocation3 + $0x1] sm:$0x1] }
 0x405   : > { %1233 = vrcp.f32 %v797_v7  ;;  %v686_v15 = vmul.f32 %v676_v11, %v666_v13 }
 0x406   : > { %v680_v12 = vpop.permute.xlu0 %679  ;;  %1235 = vpow2.f32 %v848_v33 }
 0x407   : > { %v685_v14 = vrot.slane %v680_v12, %v1768_v40  ;;  %1237 = vpow2.f32 %v850_v36 }
 0x409   : > { %v687_v22 = vmul.f32 %v685_v14, %v667_v17 }
 0x40b   : > { %v1232_v0 = vpop.eup %1231 }
 0x40c   : > { %804 = vperm.xlu1 %1214, %v1232_v0  }
 0x40f   : > { %v1234_v8 = vpop.eup %1233 }
 0x410   : > { %813 = vperm.xlu0 %1215, %v1234_v8   ;;  %v1236_v39 = vpop.eup %1235 }
 0x411   : > { %v1238_v46 = vpop.eup %1237 }
 0x43d   : > { %v732_v16 = vpop.f32.mrb[4].mxu1 }
 0x43e   : > { %v784_v18 = vadd.f32 %v732_v16, %v686_v15  ;;  %v1113_v19 = vpop.f32.mrb[5].mxu1 }
 0x43f   : > { %v735_v20 = vpop.f32.mrb[6].mxu1 }
 0x440   : > { %787 = vst.msk [vmem:[#allocation4] sm:$0x1] %vm364_vm6, %v784_v18  ;;  %v1114_v21 = vpop.f32.mrb[7].mxu1 }
 0x441   : > { %v778_v23 = vpop.f32.mrb[4].mxu0 }
 0x442   : > { %v785_v24 = vadd.f32 %v778_v23, %v687_v22  ;;  %v1119_v25 = vpop.f32.mrb[5].mxu0 }
 0x443   : > { %v781_v26 = vpop.f32.mrb[6].mxu0 }
 0x444   : > { %788 = vst.msk [vmem:[#allocation4 + $0x1] sm:$0x1] %vm364_vm6, %v785_v24  ;;  %v1120_v27 = vpop.f32.mrb[7].mxu0 }
 0x447   : > { %v800_v41 = vld [vmem:[#allocation4] sm:$0x1] }
 0x44b   : > { %v801_v47 = vld [vmem:[#allocation4 + $0x1] sm:$0x1] }
 0x48b   : > { %v805_v37 = vpop.permute.xlu1 %804 }
 0x48c   : > { %v810_v38 = vrot.slane %v805_v37, %v1768_v40 }
 0x48e   : > { %v820_v42 = vmul.f32 %v810_v38, %v800_v41  ;;  %v852_v43 = vmul.f32 %v1236_v39, %v810_v38 }
 0x48f   : > { %v814_v44 = vpop.permute.xlu0 %813 }
 0x490   : > { %822 = vst.msk [vmem:[%s342_s19] sm:$0x1] %vm364_vm6, %v820_v42  ;;  %v819_v45 = vrot.slane %v814_v44, %v1768_v40 }
 0x491   : > { %854 = vst.msk [vmem:[%s349_s0] sm:$0x1] %vm612_vm3, %v852_v43 }
 0x492   : > { %v821_v48 = vmul.f32 %v819_v45, %v801_v47  ;;  %v853_v49 = vmul.f32 %v1238_v46, %v819_v45 }
 0x494   : > { %823 = vst.msk [vmem:[%s342_s19 + $0x1] sm:$0x1] %vm364_vm6, %v821_v48 }
 0x495   : > { %855 = vst.msk [vmem:[%s349_s0 + $0x1] sm:$0x1] %vm612_vm3, %v853_v49 }
 0x496   : > { %1340 = shalt.err (!%p1337_p8)
}
 0x497   : > { %s1341_s27 = scalar_lea.hbm %s1796_s30, 32  ;;  %s1345_s9 = scalar_lea.hbm %s1891_s5, 64 }
 0x498   : > { %p1342_p11 = scmp.ne.s32.totalorder %s1796_s30, %s1341_s27  ;;  %p1346_p6 = scmp.lt.u32.totalorder %s1796_s30, %s1891_s5 }
 0x499   : > { %p1347_p13 = scmp.lt.u32.totalorder %s1345_s9, %s1341_s27  ;;  %p1349_p5 = scmp.lt.u32.totalorder %s1341_s27, %s1796_s30 }
 0x49a   : > { %p1343_p12 = pnand %p1342_p11, %p1596_p10 }
 0x49b   : > { %p1348_p0 = por %p1347_p13, %p1346_p6 }
 0x49c   : > { %p1344_p3 = pneg %p1343_p12 }
 0x49d   : > { %p1350_p9 = por %p1349_p5, %p1348_p0 }
 0x49f   : > { %p1351_p1 = pnand %p1350_p9, %p1344_p3 }
 0x4a1   : > { %1354 = shalt.err (!%p1351_p1)
}
 0x4a2   : > { %s1463_s0 = smov 16   ;;  %s1464_s14 = smov 1  }
 0x4a3   : > { %1129 = dma.vmem_to_hbm [thread:$0]  (%p1596_p10), %s1798_s17, 32, %s1796_s30, %s857_s2, %s1463_s0, %s1463_s0, %s1464_s14  }
 0x4a4   : > { %s862_s8 = scalar_lea.sflag [#allocation14], %s1696_s16  ;;  %s1355_s24 = scalar_lea.vmem %s1805_s20, 32 }
 0x4a5   : > { %p1356_p2 = scmp.ne.s32.totalorder %s1805_s20, %s1355_s24  ;;  %s1465_s13 = smov [#allocation13]  }
 0x4a6   : > { %s1359_s23 = sshll.u32 %s1465_s13, 4  ;;  %s1360_s23 = int_to_ptr.vmem [resolvable:$false] %s1359_s23 }
 0x4a7   : > { %p1357_p7 = pnand %p1356_p2, %p1596_p10  ;;  %s1361_s7 = scalar_lea.vmem %s1360_s23, 64 }
 0x4a8   : > { %p1362_p8 = scmp.lt.s32.totalorder %s1805_s20, %s1360_s23  ;;  %p1363_p11 = scmp.lt.s32.totalorder %s1361_s7, %s1355_s24 }
 0x4a9   : > { %p1358_p4 = pneg %p1357_p7 }
 0x4aa   : > { %p1364_p12 = por %p1363_p11, %p1362_p8 }
 0x4ac   : > { %p1365_p3 = pnand %p1364_p12, %p1358_p4 }
 0x4ae   : > { %1368 = shalt.err (!%p1365_p3)
}
 0x4af   : > { %s1369_s17 = scalar_lea.hbm %s1803_s15, 32  ;;  %s1373_s11 = scalar_lea.hbm %s1892_s6, 64 }
 0x4b0   : > { %p1370_p6 = scmp.ne.s32.totalorder %s1803_s15, %s1369_s17  ;;  %p1374_p5 = scmp.lt.u32.totalorder %s1803_s15, %s1892_s6 }
 0x4b1   : > { %p1375_p9 = scmp.lt.u32.totalorder %s1373_s11, %s1369_s17  ;;  %p1377_p2 = scmp.lt.u32.totalorder %s1369_s17, %s1803_s15 }
 0x4b2   : > { %p1371_p13 = pnand %p1370_p6, %p1596_p10 }
 0x4b3   : > { %p1376_p1 = por %p1375_p9, %p1374_p5 }
 0x4b4   : > { %p1372_p0 = pneg %p1371_p13 }
 0x4b5   : > { %p1378_p7 = por %p1377_p2, %p1376_p1 }
 0x4b7   : > { %p1379_p4 = pnand %p1378_p7, %p1372_p0 }
 0x4b9   : > { %1382 = shalt.err (!%p1379_p4)
}
 0x4ba   : > { %1130 = dma.vmem_to_hbm [thread:$0]  (%p1596_p10), %s1805_s20, 32, %s1803_s15, %s862_s8, %s1463_s0, %s1463_s0, %s1464_s14  }
 0x4bb PF: > { %s1924_s29 = sld [smem:[#allocation21_spill]]  ;;  %s906_s28 = sand.u32 1, %s1429_s21  }
 0x4bc   : > { %p1926_p11 = scmp.ge.s32.totalorder %s1449_s26, 2  ;;  %s907_s9 = scalar_lea.sflag [#allocation8], %s906_s28 }
 0x4c1   : > { %p1925_p8 = scmp.ne.s32.totalorder %s1924_s29, 0 }
 0x4c3   : > { %p1145_p12 = pnand %p1926_p11, %p1925_p8 }
 0x4c5   : > { %1420 = dma.done.wait (!%p1145_p12), %s907_s9, 32  }
 0x4c6   : > { %1422 = vsyncadd (!%p1145_p12), %s907_s9, 4294967264  ;;  %s916_s10 = scalar_lea.sflag [#allocation14], %s906_s28 }
 0x4c7   : > { %1424 = dma.done.wait (!%p1145_p12), %s916_s10, 32  }
 0x4c8   : > { %1426 = vsyncadd (!%p1145_p12), %s916_s10, 4294967264  ;;  %s29_s26 = sadd.s32 1, %s1449_s26   ;;  %s1927_s16 = sld [smem:[#allocation20_spill]] }
 0x4c9   : > { %p26_p3 = scmp.ge.s32.totalorder %s29_s26, 4   ;;  %s1928_s23 = sld [smem:[#allocation23_spill]] }
 0x4ca   : > { %s1929_s20 = sld [smem:[#allocation22_spill]]  ;;  %s1930_s21 = smov %s1433_s22 }
 0x4cb   : > { %s1932_s24 = smov %s1445_s25  ;;  %28 = sbr.rel (!%p26_p3) target bundleno = 13 (0xd), region = 127 }
 0x4ce   : > { %s1931_s22 = smov %s1927_s16 }
 0x4d0   : > { %s1933_s25 = smov %s1929_s20 }
 0x4d2   :  { %921 = vsyncpa [#allocation7], 1 }
 0x4d3   :  { %923 = vsyncpa [#allocation7 + $0x1], 1 }
 0x4d4   :  { %924 = vsyncpa [#allocation10], 1 }
 0x4d5   :  { %926 = vsyncpa [#allocation10 + $0x1], 1 }
 0x4d6   :  { %927 = vsyncpa [#allocation8], 1 }
 0x4d7   :  { %929 = vsyncpa [#allocation8 + $0x1], 1 }
 0x4d8   :  { %930 = vsyncpa [#allocation14], 1 }
 0x4d9   :  { %932 = vsyncpa [#allocation14 + $0x1], 1 }

</bundles_post_ra>
